<compile_context>
chip_gen: v6e
topology: v6e:2x2x1
jax: 0.10.0
libtpu: 0.0.40
codegen_flags: <defaults>
</compile_context>

<pallas_src>
import jax
import jax.numpy as jnp
from jax.experimental import pallas as pl
from jax.experimental.pallas import tpu as pltpu


def idpg_fused_kernel(x_ref, wd_ref, bd_ref, wu_ref, bu_ref, wvb_ref, bv_ref,
                      prefix_ref, value_ref):
    """Single-invocation fused forward.

    Refs:
      x_ref:     (B, d)       input activations                      [VMEM]
      wd_ref:    (d, m)       down-projection weight                 [VMEM]
      bd_ref:    (1, m)       down-projection bias                   [VMEM]
      wu_ref:    (m, t*d)     fused up-projection weight             [VMEM]
      bu_ref:    (1, t*d)     fused up-projection bias               [VMEM]
      wvb_ref:   (t*d, t)     block-diagonal value-head weight       [VMEM]
      bv_ref:    (1,)         value-head bias (scalar)               [SMEM]
      prefix_ref:(B, t*d)     lane-dense prefix output               [VMEM]
      value_ref: (B, t)       value output                           [VMEM]
    """
    # hidden = relu(x @ W_down + b_down)                       (B, m)
    h = jnp.dot(x_ref[...], wd_ref[...], preferred_element_type=jnp.float32)
    h = jnp.maximum(h + bd_ref[...], 0.0)

    # All t up-projections fused into one lane-dense matmul.   (B, t*d)
    e = jnp.dot(h, wu_ref[...], preferred_element_type=jnp.float32)
    e = e + bu_ref[...]
    prefix_ref[...] = e

    # Value head for all t heads at once: block-diagonal w_val.  (B, t)
    v = jnp.dot(e, wvb_ref[...], preferred_element_type=jnp.float32)
    value_ref[...] = v + bv_ref[0]


@jax.jit
def idpg_forward(x, w_down, b_down, w_up, b_up, w_val, b_val):
    B, d = x.shape
    t, m, _ = w_up.shape
    n = t * d

    # --- weight-layout plumbing (pure functions of the parameters) ---------
    # Fused up-projection: columns [i*d:(i+1)*d] of Wu_fused hold w_up[i].
    wu_fused = jnp.transpose(w_up, (1, 0, 2)).reshape(m, n)          # (m, t*d)
    bu_fused = b_up.reshape(1, n)                                    # (1, t*d)
    bd2 = b_down.reshape(1, m)                                       # (1, m)
    # Block-diagonal value weight: wv_block[i*d + k, j] = (i == j) * w_val[k].
    wv_block = (jnp.eye(t, dtype=x.dtype)[:, None, :] *
                w_val.reshape(1, d, 1)).reshape(n, t)                # (t*d, t)
    bv1 = b_val.reshape(1,)                                          # scalar

    prefix_flat, value_bt = pl.pallas_call(
        idpg_fused_kernel,
        out_shape=(
            jax.ShapeDtypeStruct((B, n), jnp.float32),   # prefix, lane-dense
            jax.ShapeDtypeStruct((B, t), jnp.float32),   # value, batched
        ),
        in_specs=[
            pl.BlockSpec(memory_space=pltpu.MemorySpace.VMEM),   # x
            pl.BlockSpec(memory_space=pltpu.MemorySpace.VMEM),   # W_down
            pl.BlockSpec(memory_space=pltpu.MemorySpace.VMEM),   # b_down
            pl.BlockSpec(memory_space=pltpu.MemorySpace.VMEM),   # W_up fused
            pl.BlockSpec(memory_space=pltpu.MemorySpace.VMEM),   # b_up fused
            pl.BlockSpec(memory_space=pltpu.MemorySpace.VMEM),   # W_val block
            pl.BlockSpec(memory_space=pltpu.MemorySpace.SMEM),   # b_val scalar
        ],
        out_specs=(
            pl.BlockSpec(memory_space=pltpu.MemorySpace.VMEM),
            pl.BlockSpec(memory_space=pltpu.MemorySpace.VMEM),
        ),
    )(x, w_down, bd2, wu_fused, bu_fused, wv_block, bv1)

    # Back to the PyTorch convention: (B, t, d) and (B, t, 1).
    prefix = prefix_flat.reshape(B, t, d)
    value = value_bt[..., None]
    return prefix, value


def idpg_reference(x, w_down, b_down, w_up, b_up, w_val, b_val):
    """Pure-JAX reference mirroring the PyTorch forward."""
    hidden = jax.nn.relu(x @ w_down + b_down)                    # (B, m)
    e = jnp.einsum("bm,tmd->btd", hidden, w_up) + b_up[None]     # (B, t, d)
    value = e @ w_val + b_val                                    # (B, t, 1)
    return e, value


if __name__ == "__main__":
    B, d, m, t = 2, 32, 64, 4

    key = jax.random.PRNGKey(0)
    kx, k1, k2, k3, k4, k5, k6 = jax.random.split(key, 7)

    x = jax.random.normal(kx, (B, d), dtype=jnp.float32)

    # Deterministic synthetic parameters (shapes match nn.Linear(d, m),
    # t x nn.Linear(m, d), nn.Linear(d, 1)); stored as [in, out].
    w_down = jax.random.normal(k1, (d, m), dtype=jnp.float32) * 0.1
    b_down = jax.random.normal(k2, (m,), dtype=jnp.float32) * 0.1
    w_up = jax.random.normal(k3, (t, m, d), dtype=jnp.float32) * 0.1
    b_up = jax.random.normal(k4, (t, d), dtype=jnp.float32) * 0.1
    w_val = jax.random.normal(k5, (d, 1), dtype=jnp.float32) * 0.1
    b_val = jax.random.normal(k6, (1,), dtype=jnp.float32) * 0.1

    prefix, value = idpg_forward(x, w_down, b_down, w_up, b_up, w_val, b_val)
    jax.block_until_ready((prefix, value))

    prefix_ref, value_ref = idpg_reference(x, w_down, b_down, w_up, b_up,
                                           w_val, b_val)

    assert prefix.shape == (B, t, d), prefix.shape
    assert value.shape == (B, t, 1), value.shape
    assert jnp.allclose(prefix, prefix_ref, atol=1e-5, rtol=1e-5)
    assert jnp.allclose(value, value_ref, atol=1e-5, rtol=1e-5)

    print("KERNEL_OK")
</pallas_src>

<mosaic_0001>
module attributes {stable_mosaic.version = 11 : i64} {
  func.func @idpg_fused_kernel(%arg0: memref<2x32xf32, #tpu.memory_space<vmem>>, %arg1: memref<32x64xf32, #tpu.memory_space<vmem>>, %arg2: memref<1x64xf32, #tpu.memory_space<vmem>>, %arg3: memref<64x128xf32, #tpu.memory_space<vmem>>, %arg4: memref<1x128xf32, #tpu.memory_space<vmem>>, %arg5: memref<128x4xf32, #tpu.memory_space<vmem>>, %arg6: memref<1xf32, #tpu.memory_space<smem>>, %arg7: memref<2x128xf32, #tpu.memory_space<vmem>>, %arg8: memref<2x4xf32, #tpu.memory_space<vmem>>) attributes {dimension_semantics = [], scalar_prefetch = 0 : i64, scratch_operands = 0 : i64, tpu.core_type = #tpu.core_type<tc>} {
    %c0 = arith.constant 0 : index
    %c0_0 = arith.constant 0 : index
    %0 = vector.load %arg0[%c0, %c0_0] : memref<2x32xf32, #tpu.memory_space<vmem>>, vector<2x32xf32>
    %c0_1 = arith.constant 0 : index
    %c0_2 = arith.constant 0 : index
    %1 = vector.load %arg1[%c0_1, %c0_2] : memref<32x64xf32, #tpu.memory_space<vmem>>, vector<32x64xf32>
    %cst = arith.constant dense<0.000000e+00> : vector<2x64xf32>
    %2 = tpu.matmul %0, %1, %cst {dimension_numbers = #tpu.dot_dimension_numbers<[1], [0], [0], [1], [0, 0, 1, 1], [], []>} : vector<2x32xf32>, vector<32x64xf32>, vector<2x64xf32> -> vector<2x64xf32>
    %c0_3 = arith.constant 0 : index
    %c0_4 = arith.constant 0 : index
    %3 = vector.load %arg2[%c0_3, %c0_4] : memref<1x64xf32, #tpu.memory_space<vmem>>, vector<1x64xf32>
    %4 = vector.broadcast %3 : vector<1x64xf32> to vector<2x64xf32>
    %5 = arith.addf %2, %4 : vector<2x64xf32>
    %cst_5 = arith.constant 0.000000e+00 : f32
    %6 = vector.broadcast %cst_5 : f32 to vector<2x64xf32>
    %7 = arith.maximumf %5, %6 : vector<2x64xf32>
    %c0_6 = arith.constant 0 : index
    %c0_7 = arith.constant 0 : index
    %8 = vector.load %arg3[%c0_6, %c0_7] : memref<64x128xf32, #tpu.memory_space<vmem>>, vector<64x128xf32>
    %cst_8 = arith.constant dense<0.000000e+00> : vector<2x128xf32>
    %9 = tpu.matmul %7, %8, %cst_8 {dimension_numbers = #tpu.dot_dimension_numbers<[1], [0], [0], [1], [0, 0, 1, 1], [], []>} : vector<2x64xf32>, vector<64x128xf32>, vector<2x128xf32> -> vector<2x128xf32>
    %c0_9 = arith.constant 0 : index
    %c0_10 = arith.constant 0 : index
    %10 = vector.load %arg4[%c0_9, %c0_10] : memref<1x128xf32, #tpu.memory_space<vmem>>, vector<1x128xf32>
    %11 = vector.broadcast %10 : vector<1x128xf32> to vector<2x128xf32>
    %12 = arith.addf %9, %11 : vector<2x128xf32>
    %c0_11 = arith.constant 0 : index
    %c0_12 = arith.constant 0 : index
    %13 = vector.load %arg7[%c0_11, %c0_12] : memref<2x128xf32, #tpu.memory_space<vmem>>, vector<2x128xf32>
    tpu.vector_store %arg7[%c0_11, %c0_12], %12 {strides = array<i32>} : memref<2x128xf32, #tpu.memory_space<vmem>>, vector<2x128xf32>,
    %c0_13 = arith.constant 0 : index
    %c0_14 = arith.constant 0 : index
    %14 = vector.load %arg5[%c0_13, %c0_14] : memref<128x4xf32, #tpu.memory_space<vmem>>, vector<128x4xf32>
    %cst_15 = arith.constant dense<0.000000e+00> : vector<2x4xf32>
    %15 = tpu.matmul %12, %14, %cst_15 {dimension_numbers = #tpu.dot_dimension_numbers<[1], [0], [0], [1], [0, 0, 1, 1], [], []>} : vector<2x128xf32>, vector<128x4xf32>, vector<2x4xf32> -> vector<2x4xf32>
    %c0_16 = arith.constant 0 : index
    %16 = memref.load %arg6[%c0_16] : memref<1xf32, #tpu.memory_space<smem>>
    %17 = vector.broadcast %16 : f32 to vector<2x4xf32>
    %18 = arith.addf %15, %17 : vector<2x4xf32>
    %c0_17 = arith.constant 0 : index
    %c0_18 = arith.constant 0 : index
    %19 = vector.load %arg8[%c0_17, %c0_18] : memref<2x4xf32, #tpu.memory_space<vmem>>, vector<2x4xf32>
    tpu.vector_store %arg8[%c0_17, %c0_18], %18 {strides = array<i32>} : memref<2x4xf32, #tpu.memory_space<vmem>>, vector<2x4xf32>,
    return
  }
}

</mosaic_0001>

<bundles_post_ra>
// kernel: idpg_forward.1
= control target key start
LH: loop header
LB: loop body
LE: loop exit
PB: predicated region body
PF: predicated region fallthrough
CT: control target
= control target key end

     0   :  { %v440_v1 = vmov 0.0   ;;  %vm441_vm0 = vmmov 0   ;;  %s624_s0 = inlined_call_operand.vmem [shape: f32[2,32], index: 0, kind: input, shape index: {}]   ;;  %s625_s1 = inlined_call_operand.vmem [shape: f32[32,64], index: 1, kind: input, shape index: {}]   ;;  %s626_s2 = inlined_call_operand.vmem [shape: f32[1,64], index: 2, kind: input, shape index: {}]   ;;  %s627_s3 = inlined_call_operand.vmem [shape: f32[64,128], index: 3, kind: input, shape index: {}]   ;;  %s628_s4 = inlined_call_operand.vmem [shape: f32[1,128], index: 4, kind: input, shape index: {}]   ;;  %s629_s5 = inlined_call_operand.vmem [shape: f32[128,4], index: 5, kind: input, shape index: {}]   ;;  %s630_s6 = inlined_call_operand.<no memory space> [shape: f32[1], index: 6, kind: input, shape index: {}]   ;;  %s631_s7 = inlined_call_operand.vmem [shape: f32[2,128], index: 7, kind: output, shape index: {0}]   ;;  %s632_s8 = inlined_call_operand.hbm [shape: f32[2,4], index: 8, kind: output, shape index: {1}]  }
   0x1   :  { %v34_v0 = vld [vmem:[%s625_s1 + $0x18] sm:$0xff]  ;;  %350 = vmatprep.subr.mxu1 %v440_v1  ;;  %v33_v2 = vld [vmem:[%s625_s1 + $0x10] sm:$0xff]  ;;  %358 = vmatprep.mubr.msk.f32.mxu1 %vm441_vm0, %v440_v1  ;;  %v32_v3 = vld [vmem:[%s625_s1 + $0x8] sm:$0xff] }
   0x2   :  { %351 = vmatpush3.msra.mxu1 %v34_v0  ;;  %380 = vmatprep.subr.mxu0 %v440_v1 }
   0x3   :  { %352 = vmatprep.subr.mxu1 %v440_v1  ;;  %412 = vmatprep.mubr.msk.f32.mxu0 %vm441_vm0, %v440_v1 }
   0x4   :  { %15 = vsyncpa [#allocation4], 0  ;;  %353 = vmatpush3.msra.mxu1 %v33_v2  ;;  %v31_v4 = vld [vmem:[%s625_s1] sm:$0xff]  ;;  %vm42_vm1 = vcmask 261120   ;;  %v124_v6 = vld [vmem:[%s627_s3 + $0x38] sm:$0xff]  ;;  %vm132_vm2 = vcmask 523264   ;;  %v224_v39 = vstv %s630_s6 }
   0x5   :  { %354 = vmatprep.subr.mxu1 %v440_v1  ;;  %v30_v5 = vld [vmem:[%s624_s0] sm:$0x3]  ;;  %v123_v7 = vld [vmem:[%s627_s3 + $0x30] sm:$0xff]  ;;  %v122_v8 = vld [vmem:[%s627_s3 + $0x28] sm:$0xff]  ;;  %s442_s1 = smov [#allocation3]   ;;  %vm295_vm3 = vcmask 25600  }
   0x6   :  { %355 = vmatpush3.msra.mxu1 %v32_v3  ;;  %v121_v9 = vld [vmem:[%s627_s3 + $0x20] sm:$0xff]  ;;  %v120_v10 = vld [vmem:[%s627_s3 + $0x18] sm:$0xff]  ;;  %v119_v11 = vld [vmem:[%s627_s3 + $0x10] sm:$0xff]  ;;  %s305_s19 = sshll.u32 %s442_s1, 4  ;;  %s306_s19 = int_to_ptr.vmem [resolvable:$true] %s305_s19 }
   0x7   :  { %356 = vmatprep.subr.mxu1 %v440_v1  ;;  %v118_v12 = vld [vmem:[%s627_s3 + $0x8] sm:$0xff]  ;;  %v117_v13 = vld [vmem:[%s627_s3] sm:$0xff]  ;;  %v222_v14 = vld [vmem:[%s629_s5 + $0x78] sm:$0xff]  ;;  %p423_p1 = scmp.lt.s32.totalorder %s306_s19, %s306_s19 }
   0x8   :  { %357 = vmatpush3.msra.mxu1 %v31_v4  ;;  %v221_v15 = vld [vmem:[%s629_s5 + $0x70] sm:$0xff]  ;;  %381 = vmatpush3.msra.mxu0 %v222_v14  ;;  %v220_v16 = vld [vmem:[%s629_s5 + $0x68] sm:$0xff]  ;;  %v219_v17 = vld [vmem:[%s629_s5 + $0x60] sm:$0xff] }
   0x9   :  { %359 = vmatmul.mubr.msk.f32.vlgmr.msra.gmra.mxu1 %vm42_vm1, %v30_v5  ;;  %361 = vmatprep.subr.mxu1 %v440_v1  ;;  %v218_v18 = vld [vmem:[%s629_s5 + $0x58] sm:$0xff]  ;;  %v217_v19 = vld [vmem:[%s629_s5 + $0x50] sm:$0xff]  ;;  %v216_v20 = vld [vmem:[%s629_s5 + $0x48] sm:$0xff] }
   0xa   :  { %362 = vmatpush3.msra.mxu1 %v124_v6  ;;  %377 = vmatprep.mubr.msk.f32.mxu1 %vm441_vm0, %v440_v1  ;;  %v215_v21 = vld [vmem:[%s629_s5 + $0x40] sm:$0xff]  ;;  %v214_v22 = vld [vmem:[%s629_s5 + $0x38] sm:$0xff]  ;;  %v213_v23 = vld [vmem:[%s629_s5 + $0x30] sm:$0xff] }
   0xb   :  { %363 = vmatprep.subr.mxu1 %v440_v1  ;;  %382 = vmatprep.subr.mxu0 %v440_v1  ;;  %v212_v24 = vld [vmem:[%s629_s5 + $0x28] sm:$0xff]  ;;  %v211_v25 = vld [vmem:[%s629_s5 + $0x20] sm:$0xff]  ;;  %v210_v26 = vld [vmem:[%s629_s5 + $0x18] sm:$0xff] }
   0xc   :  { %364 = vmatpush3.msra.mxu1 %v123_v7  ;;  %383 = vmatpush3.msra.mxu0 %v221_v15  ;;  %v209_v27 = vld [vmem:[%s629_s5 + $0x10] sm:$0xff]  ;;  %v315_v28 = vld [vmem:[%s626_s2] ss:$0 sm:$0xff]  ;;  %v208_v33 = vld [vmem:[%s629_s5 + $0x8] sm:$0xff] }
   0xd   :  { %365 = vmatprep.subr.mxu1 %v440_v1  ;;  %384 = vmatprep.subr.mxu0 %v440_v1  ;;  %v207_v34 = vld [vmem:[%s629_s5] sm:$0xff] }
   0xe   :  { %366 = vmatpush3.msra.mxu1 %v122_v8  ;;  %385 = vmatpush3.msra.mxu0 %v220_v16  ;;  %v317_v35 = vld [vmem:[%s628_s4] ss:$0 sm:$0xff]  ;;  %s418_s4 = scalar_lea.vmem %s306_s19, 32 }
   0xf   :  { %367 = vmatprep.subr.mxu1 %v440_v1  ;;  %386 = vmatprep.subr.mxu0 %v440_v1  ;;  %p419_p0 = scmp.ne.s32.totalorder %s306_s19, %s418_s4  ;;  %p424_p2 = scmp.lt.s32.totalorder %s418_s4, %s418_s4 }
  0x10   :  { %368 = vmatpush3.msra.mxu1 %v121_v9  ;;  %387 = vmatpush3.msra.mxu0 %v219_v17 }
  0x11   :  { %369 = vmatprep.subr.mxu1 %v440_v1  ;;  %388 = vmatprep.subr.mxu0 %v440_v1  ;;  %p425_p3 = por %p424_p2, %p423_p1 }
  0x12   :  { %370 = vmatpush3.msra.mxu1 %v120_v10  ;;  %389 = vmatpush3.msra.mxu0 %v218_v18 }
  0x13   :  { %371 = vmatprep.subr.mxu1 %v440_v1  ;;  %390 = vmatprep.subr.mxu0 %v440_v1  ;;  %p426_p4 = pnand %p425_p3, %p419_p0 }
  0x14   :  { %372 = vmatpush3.msra.mxu1 %v119_v11  ;;  %391 = vmatpush3.msra.mxu0 %v217_v19 }
  0x15   :  { %373 = vmatprep.subr.mxu1 %v440_v1  ;;  %392 = vmatprep.subr.mxu0 %v440_v1 }
  0x16   :  { %374 = vmatpush3.msra.mxu1 %v118_v12  ;;  %393 = vmatpush3.msra.mxu0 %v216_v20 }
  0x17   :  { %375 = vmatprep.subr.mxu1 %v440_v1  ;;  %394 = vmatprep.subr.mxu0 %v440_v1 }
  0x18   :  { %376 = vmatpush3.msra.mxu1 %v117_v13  ;;  %395 = vmatpush3.msra.mxu0 %v215_v21 }
  0x19   :  { %396 = vmatprep.subr.mxu0 %v440_v1 }
  0x1a   :  { %397 = vmatpush3.msra.mxu0 %v214_v22 }
  0x1b   :  { %398 = vmatprep.subr.mxu0 %v440_v1 }
  0x1c   :  { %399 = vmatpush3.msra.mxu0 %v213_v23 }
  0x1d   :  { %400 = vmatprep.subr.mxu0 %v440_v1 }
  0x1e   :  { %401 = vmatpush3.msra.mxu0 %v212_v24 }
  0x1f   :  { %402 = vmatprep.subr.mxu0 %v440_v1 }
  0x20   :  { %403 = vmatpush3.msra.mxu0 %v211_v25 }
  0x21   :  { %404 = vmatprep.subr.mxu0 %v440_v1 }
  0x22   :  { %405 = vmatpush3.msra.mxu0 %v210_v26 }
  0x23   :  { %406 = vmatprep.subr.mxu0 %v440_v1 }
  0x24   :  { %407 = vmatpush3.msra.mxu0 %v209_v27 }
  0x25   :  { %408 = vmatprep.subr.mxu0 %v440_v1 }
  0x26   :  { %409 = vmatpush3.msra.mxu0 %v208_v33 }
  0x27   :  { %410 = vmatprep.subr.mxu0 %v440_v1 }
  0x28   :  { %411 = vmatpush3.msra.mxu0 %v207_v34 }
  0xc9   :  { %v112_v29 = vpop.f32.mrf.mxu1 }
  0xca   :  { %v113_v30 = vadd.f32 %v315_v28, %v112_v29 }
  0xcb   :  { %v360_v31 = vpop.f32.mrf.mxu1 }
  0xcc   :  { %v116_v32 = vmax.f32 %v113_v30, 0.0 }
  0xce   :  { %378 = vmatmul.mubr.msk.f32.vlgmr.msra.gmra.mxu1 %vm132_vm2, %v116_v32 }
 0x18e   :  { %v202_v36 = vpop.f32.mrf.mxu1 }
 0x18f   :  { %v203_v37 = vadd.f32 %v317_v35, %v202_v36 }
 0x190   :  { %v379_v38 = vpop.f32.mrf.mxu1 }
 0x191   :  { %206 = vst [vmem:[%s631_s7] sm:$0x3] %v203_v37  ;;  %413 = vmatmul.mubr.f32.vlgmr.msra.gmra.mxu0 %v203_v37 }
 0x251   :  { %v291_v40 = vpop.f32.mrf.mxu0 }
 0x252   :  { %v292_v41 = vadd.f32 %v291_v40, %v224_v39 }
 0x253   :  { %v414_v42 = vpop.f32.mrf.mxu0 }
 0x254   :  { %296 = vst.msk [vmem:[#allocation3] sm:$0x3] %vm295_vm3, %v292_v41 }
 0x255   :  { %429 = shalt.err (!%p426_p4)
}
 0x256   :  { %308 = dma.vmem_to_hbm [thread:$0]  %s306_s19, 32, %s632_s8, [#allocation4]  }
 0x257   :  { %438 = dma.done.wait [#allocation4], 32  }
 0x258   :  { %439 = vsyncadd [#allocation4], 4294967264 }
 0x259   :  { %314 = vsyncpa [#allocation4], 1 }

</bundles_post_ra>
